<compile_context>
chip_gen: v7x
topology: tpu7x:2x2x1
jax: 0.10.0
libtpu: 0.0.40
codegen_flags: <defaults>
</compile_context>

<pallas_src>
import functools

import jax
import jax.numpy as jnp
from jax.experimental import pallas as pl
from jax.experimental.pallas import tpu as pltpu


# ----------------------------------------------------------------------------
# Kernel 1: one-off adjacency preprocessing (hoist out of the per-call path).
#   a_hat : binarized adjacency with self loops (values exactly 0/1 -> bf16)
#   dr    : deg(a_hat)^{-1/2}, single (N,1) degree vector used on BOTH sides
# Assumes a symmetric spatial-neighbor adjacency (as in SpaMI); with a single
# dr vector this matches PyG gcn_norm's one-degree-vector normalization.
# ----------------------------------------------------------------------------
def _gcn_prep_kernel(adj_ref, a_hat_ref, dr_ref):
    adj = adj_ref[...]
    n = adj.shape[0]
    row = jax.lax.broadcasted_iota(jnp.int32, (n, n), 0)
    col = jax.lax.broadcasted_iota(jnp.int32, (n, n), 1)
    # Single select: self loops with fill value 1, edges binarized.
    a_hat = jnp.where(row == col, 1.0, (adj != 0.0).astype(jnp.float32))
    deg = jnp.sum(a_hat, axis=1, keepdims=True)        # (N,1), >= 1 (self loop)
    dr_ref[...] = jax.lax.rsqrt(deg)
    a_hat_ref[...] = a_hat.astype(jnp.bfloat16)


def preprocess_adjacency(adj):
    """Compute (A_hat bf16, dr f32) once for a static graph."""
    adj = adj.astype(jnp.float32)
    n = adj.shape[0]
    return pl.pallas_call(
        _gcn_prep_kernel,
        out_shape=(jax.ShapeDtypeStruct((n, n), jnp.bfloat16),
                   jax.ShapeDtypeStruct((n, 1), jnp.float32)),
        grid=(1,),
        in_specs=[pl.BlockSpec((n, n), lambda i: (0, 0))],
        out_specs=(pl.BlockSpec((n, n), lambda i: (0, 0)),
                   pl.BlockSpec((n, 1), lambda i: (0, 0))),
        compiler_params=pltpu.CompilerParams(
            dimension_semantics=("arbitrary",)),
    )(adj)


# ----------------------------------------------------------------------------
# Kernel 2: fused decoder  (GCNConv1 -> ReLU -> GCNConv2), all in VMEM.
#   norm_adj @ Y is computed as  dr * (A_hat @ (dr * Y))  (never materialized).
#   All matmul operands bf16, accumulation f32.
# ----------------------------------------------------------------------------
def _omics1_decoder_kernel(a_hat_ref, dr_ref, emb_ref, w1_ref, b1_ref,
                           w2_ref, b2_ref, out_ref):
    a_hat = a_hat_ref[...]                              # (N,N) bf16
    dr = dr_ref[...]                                    # (N,1) f32

    # --- decoder_conv1 + ReLU (dropout == identity in eval mode) -----------
    # Reassociated: (dr*(A_hat@(dr*emb))) @ W1  (aggregation on narrow emb;
    # exact by associativity of the diagonal row scaling with right-matmul).
    s1 = (dr * emb_ref[...]).astype(jnp.bfloat16)       # (N,D) bf16
    agg1 = dr * jnp.dot(a_hat, s1, preferred_element_type=jnp.float32)
    h = jnp.dot(agg1.astype(jnp.bfloat16), w1_ref[...],
                preferred_element_type=jnp.float32) + b1_ref[...]
    h = jnp.maximum(h, 0.0)

    # --- decoder_conv2: dr*(A_hat@(dr*(h@W2))) + b2 -------------------------
    xw2 = jnp.dot(h.astype(jnp.bfloat16), w2_ref[...],
                  preferred_element_type=jnp.float32)   # (N,F) f32
    s2 = (dr * xw2).astype(jnp.bfloat16)
    out = dr * jnp.dot(a_hat, s2, preferred_element_type=jnp.float32) \
        + b2_ref[...]
    out_ref[...] = out.astype(out_ref.dtype)


def omics1_decoder_forward(params, emb, a_hat, dr):
    """Fused Pallas decoder given preprocessed (A_hat, dr)."""
    emb = emb.astype(jnp.bfloat16)
    N, D = emb.shape
    H = params["W1"].shape[1]          # 256 (fixed in the module)
    F_out = params["W2"].shape[1]      # input_dim (reconstruction dim)

    w1 = params["W1"].astype(jnp.bfloat16)
    w2 = params["W2"].astype(jnp.bfloat16)
    b1 = params["b1"].reshape(1, H).astype(jnp.float32)
    b2 = params["b2"].reshape(1, F_out).astype(jnp.float32)

    return pl.pallas_call(
        _omics1_decoder_kernel,
        out_shape=jax.ShapeDtypeStruct((N, F_out), jnp.float32),
        grid=(1,),
        in_specs=[
            pl.BlockSpec((N, N), lambda i: (0, 0)),      # A_hat (bf16)
            pl.BlockSpec((N, 1), lambda i: (0, 0)),      # dr
            pl.BlockSpec((N, D), lambda i: (0, 0)),      # emb
            pl.BlockSpec((D, H), lambda i: (0, 0)),      # W1
            pl.BlockSpec((1, H), lambda i: (0, 0)),      # b1
            pl.BlockSpec((H, F_out), lambda i: (0, 0)),  # W2
            pl.BlockSpec((1, F_out), lambda i: (0, 0)),  # b2
        ],
        out_specs=pl.BlockSpec((N, F_out), lambda i: (0, 0)),
        compiler_params=pltpu.CompilerParams(
            dimension_semantics=("arbitrary",)),
    )(a_hat, dr, emb, w1, b1, w2, b2)


def omics1_decoder_forward_from_adj(params, emb, adj):
    """Convenience: preprocess the (static) graph, then run the decoder."""
    a_hat, dr = preprocess_adjacency(adj)
    return omics1_decoder_forward(params, emb, a_hat, dr)


# ----------------------------------------------------------------------------
# Parameter init + plain-JAX reference (numerical sanity check)
# ----------------------------------------------------------------------------
def xavier_uniform(key, shape):
    fan_in, fan_out = shape[0], shape[-1]
    limit = (6.0 / (fan_in + fan_out)) ** 0.5
    return jax.random.uniform(key, shape, jnp.float32, -limit, limit)


def init_decoder_params(key, input_dim, out_dim, hidden=256):
    k1, k2 = jax.random.split(key)
    return {
        "W1": xavier_uniform(k1, (out_dim, hidden)),
        "b1": jnp.zeros((hidden,), jnp.float32),
        "W2": xavier_uniform(k2, (hidden, input_dim)),
        "b2": jnp.zeros((input_dim,), jnp.float32),
    }


def reference_decoder(params, emb, adj):
    n = adj.shape[0]
    a_hat = jnp.maximum((adj != 0).astype(jnp.float32),
                        jnp.eye(n, dtype=jnp.float32))
    deg = jnp.sum(a_hat, axis=1)
    dinv = 1.0 / jnp.sqrt(deg)
    na = dinv[:, None] * a_hat * dinv[None, :]
    mm = functools.partial(jnp.matmul, precision=jax.lax.Precision.HIGHEST)
    h = mm(na, mm(emb, params["W1"])) + params["b1"]
    h = jnp.maximum(h, 0.0)
    return mm(na, mm(h, params["W2"])) + params["b2"]


# ----------------------------------------------------------------------------
# Main
# ----------------------------------------------------------------------------
if __name__ == "__main__":
    key = jax.random.PRNGKey(0)
    N = 64            # spatial spots / graph nodes
    out_dim = 64      # latent embedding dim (decoder input)
    input_dim = 128   # omics-1 feature dim (reconstruction output)
    hidden = 256      # fixed GCN hidden width in the module

    k_adj, k_emb, k_par = jax.random.split(key, 3)

    # Symmetric adjacency without self loops (spatial neighbor graph).
    r = jax.random.bernoulli(k_adj, 0.15, (N, N)).astype(jnp.float32)
    a = jnp.triu(r, 1)
    adj = a + a.T

    emb = jax.random.normal(k_emb, (N, out_dim), jnp.float32)
    params = init_decoder_params(k_par, input_dim, out_dim, hidden)

    # Preprocess the static graph once, then run the fused decoder.
    a_hat, dr = preprocess_adjacency(adj)
    omics1_rec = omics1_decoder_forward(params, emb, a_hat, dr)
    omics1_rec = jax.block_until_ready(omics1_rec)

    # Sanity checks: shape, finiteness, agreement with an f32 plain-JAX
    # reference (bf16 MXU operands -> ~1% relative error expected).
    assert omics1_rec.shape == (N, input_dim)
    assert bool(jnp.all(jnp.isfinite(omics1_rec)))
    ref = reference_decoder(params, emb, adj)
    rel_err = jnp.linalg.norm(omics1_rec - ref) / (jnp.linalg.norm(ref) + 1e-12)
    assert float(rel_err) < 3e-2, f"relative error too large: {float(rel_err)}"

    print("KERNEL_OK")
</pallas_src>

<mosaic_0001>
module attributes {stable_mosaic.version = 11 : i64} {
  func.func @_gcn_prep_kernel(%arg0: i32, %arg1: memref<64x64xf32, #tpu.memory_space<vmem>>, %arg2: memref<64x64xbf16, #tpu.memory_space<vmem>>, %arg3: memref<64x1xf32, #tpu.memory_space<vmem>>) attributes {dimension_semantics = [#tpu.dimension_semantics<arbitrary>], iteration_bounds = array<i64: 1>, scalar_prefetch = 0 : i64, scratch_operands = 0 : i64, tpu.core_type = #tpu.core_type<tc>, window_params = [{pipeline_mode = #tpu.pipeline_mode<synchronous>, transform_indices = @transform_0, window_bounds = array<i64: 64, 64>}, {pipeline_mode = #tpu.pipeline_mode<synchronous>, transform_indices = @transform_1, window_bounds = array<i64: 64, 64>}, {pipeline_mode = #tpu.pipeline_mode<synchronous>, transform_indices = @transform_2, window_bounds = array<i64: 64, 1>}]} {
    %c0 = arith.constant 0 : index
    %c0_0 = arith.constant 0 : index
    %0 = vector.load %arg1[%c0, %c0_0] : memref<64x64xf32, #tpu.memory_space<vmem>>, vector<64x64xf32>
    %1 = tpu.iota {dimensions = array<i32: 0>} : vector<64x64xi32>
    %2 = tpu.iota {dimensions = array<i32: 1>} : vector<64x64xi32>
    %3 = arith.cmpi eq, %1, %2 : vector<64x64xi32>
    %cst = arith.constant 0.000000e+00 : f32
    %4 = vector.broadcast %cst : f32 to vector<64x64xf32>
    %5 = arith.cmpf one, %0, %4 : vector<64x64xf32>
    %6 = arith.extui %5 : vector<64x64xi1> to vector<64x64xi32>
    %7 = arith.sitofp %6 : vector<64x64xi32> to vector<64x64xf32>
    %cst_1 = arith.constant 1.000000e+00 : f32
    %8 = vector.broadcast %cst_1 : f32 to vector<64x64xf32>
    %9 = arith.select %3, %8, %7 : vector<64x64xi1>, vector<64x64xf32>
    %cst_2 = arith.constant dense<0.000000e+00> : vector<64xf32>
    %10 = vector.multi_reduction <add>, %9, %cst_2 [1] : vector<64x64xf32> to vector<64xf32>
    %11 = vector.shape_cast %10 : vector<64xf32> to vector<64x1xf32>
    %12 = math.rsqrt %11 : vector<64x1xf32>
    %c0_3 = arith.constant 0 : index
    %c0_4 = arith.constant 0 : index
    %13 = vector.load %arg3[%c0_3, %c0_4] : memref<64x1xf32, #tpu.memory_space<vmem>>, vector<64x1xf32>
    tpu.vector_store %arg3[%c0_3, %c0_4], %12 {strides = array<i32>} : memref<64x1xf32, #tpu.memory_space<vmem>>, vector<64x1xf32>,
    %14 = arith.truncf %9 : vector<64x64xf32> to vector<64x64xbf16>
    %c0_5 = arith.constant 0 : index
    %c0_6 = arith.constant 0 : index
    %15 = vector.load %arg2[%c0_5, %c0_6] : memref<64x64xbf16, #tpu.memory_space<vmem>>, vector<64x64xbf16>
    tpu.vector_store %arg2[%c0_5, %c0_6], %14 {strides = array<i32>} : memref<64x64xbf16, #tpu.memory_space<vmem>>, vector<64x64xbf16>,
    return
  }
  func.func @transform_0(%arg0: i32) -> (i32, i32) {
    %c0_i32 = arith.constant 0 : i32
    %c0_i32_0 = arith.constant 0 : i32
    %c0_i32_1 = arith.constant 0 : i32
    return %c0_i32, %c0_i32_0 : i32, i32
  }
  func.func @transform_1(%arg0: i32) -> (i32, i32) {
    %c0_i32 = arith.constant 0 : i32
    %c0_i32_0 = arith.constant 0 : i32
    %c0_i32_1 = arith.constant 0 : i32
    return %c0_i32, %c0_i32_0 : i32, i32
  }
  func.func @transform_2(%arg0: i32) -> (i32, i32) {
    %c0_i32 = arith.constant 0 : i32
    %c0_i32_0 = arith.constant 0 : i32
    %c0_i32_1 = arith.constant 0 : i32
    return %c0_i32, %c0_i32_0 : i32, i32
  }
}

</mosaic_0001>

<bundles_post_ra>
// kernel: tpu_custom_call.1
= control target key start
LH: loop header
LB: loop body
LE: loop exit
PB: predicated region body
PF: predicated region fallthrough
CT: control target
= control target key end

     0   :  { %8 = vsyncpa [#allocation3], 0  ;;  %s407_s0 = inlined_call_operand.hbm [shape: f32[64,64], index: 0, kind: input, shape index: {}]   ;;  %s408_s1 = inlined_call_operand.hbm [shape: bf16[64,64], index: 1, kind: output, shape index: {0}]   ;;  %s409_s2 = inlined_call_operand.vmem [shape: f32[64,1], index: 2, kind: output, shape index: {1}]  }
   0x1   :  { %9 = vsyncpa [#allocation4], 0  ;;  %s283_s9 = smov [#allocation2]   ;;  %s235_s13 = scalar_lea.hbm %s407_s0, 1024 }
   0x2   :  { %s15_s10 = sshll.u32 %s283_s9, 4  ;;  %p236_p0 = scmp.ne.s32.totalorder %s407_s0, %s235_s13  ;;  %s16_s10 = int_to_ptr.vmem [resolvable:$true] %s15_s10 }
   0x3   :  { %p239_p1 = scmp.lt.u32.totalorder %s235_s13, %s407_s0 }
   0x5   :  { %p241_p2 = pnand %p239_p1, %p236_p0 }
   0x7   :  { %244 = shalt.err (!%p241_p2)
}
   0x8   :  { %s245_s18 = scalar_lea.vmem %s16_s10, 1024  ;;  %p250_p4 = scmp.lt.s32.totalorder %s16_s10, %s16_s10 }
   0x9   :  { %p246_p3 = scmp.ne.s32.totalorder %s16_s10, %s245_s18  ;;  %p251_p5 = scmp.lt.s32.totalorder %s245_s18, %s245_s18 }
   0xb   :  { %p252_p6 = por %p251_p5, %p250_p4 }
   0xd   :  { %p253_p7 = pnand %p252_p6, %p246_p3 }
   0xf   :  { %256 = shalt.err (!%p253_p7)
}
  0x10   :  { %s284_s19 = smov 128   ;;  %s285_s20 = smov 8  }
  0x11   :  { %21 = dma.hbm_to_vmem [thread:$0]  %s407_s0, 1024, %s16_s10, [#allocation3], %s284_s19, %s284_s19, %s285_s20  }
  0x12   :  { %279 = dma.done.wait [#allocation3], 1024  }
  0x13   :  { %280 = vsyncadd [#allocation3], 4294966272  ;;  %v33_v0 = vlaneseq  ;;  %vm84_vm0 = vcmask 523264   ;;  %vm158_vm2 = vcmask 519168   ;;  %v27_v10 = vld [vmem:[#allocation2 + $0x10] sm:$0xff]  ;;  %v25_v11 = vld [vmem:[#allocation2] sm:$0xff] }
  0x14   :  { %v28_v12 = vld [vmem:[#allocation2 + $0x18] sm:$0xff]  ;;  %vm54_vm9 = vcmp.ne.f32.partialorder %v27_v10, 0.0  ;;  %vm52_vm10 = vcmp.ne.f32.partialorder %v25_v11, 0.0  ;;  %v26_v13 = vld [vmem:[#allocation2 + $0x8] sm:$0xff]  ;;  %v286_v14 = vmov 0.0   ;;  %v29_v23 = vld [vmem:[#allocation2 + $0x20] sm:$0xff] }
  0x15   :  { %v34_v1 = vshrl.u32 %v33_v0, 7  ;;  %v317_v2 = vand.u32 127, %v33_v0  ;;  %vm55_vm11 = vcmp.ne.f32.partialorder %v28_v12, 0.0  ;;  %v190_v15 = vsel %vm54_vm9, 1.0, %v286_v14  ;;  %v30_v18 = vld [vmem:[#allocation2 + $0x28] sm:$0xff]  ;;  %v32_v28 = vld [vmem:[#allocation2 + $0x38] sm:$0xff] }
  0x16   :  { %v188_v16 = vsel %vm52_vm10, 1.0, %v286_v14  ;;  %v191_v17 = vsel %vm55_vm11, 1.0, %v286_v14  ;;  %vm53_vm13 = vcmp.ne.f32.partialorder %v26_v13, 0.0  ;;  %v31_v29 = vld [vmem:[#allocation2 + $0x30] sm:$0xff]  ;;  %vm57_vm14 = vcmp.ne.f32.partialorder %v30_v18, 0.0  ;;  %s287_s0 = smov [#allocation5]  }
  0x17   :  { %v36_v3 = vadd.s32 16, %v34_v1  ;;  %v37_v4 = vadd.s32 24, %v34_v1  ;;  %v35_v5 = vadd.s32 8, %v34_v1  ;;  %v39_v6 = vadd.s32 40, %v34_v1  ;;  %s172_s23 = sshll.u32 %s287_s0, 4  ;;  %s173_s23 = int_to_ptr.vmem [resolvable:$true] %s172_s23 }
  0x18   :  { %v38_v7 = vadd.s32 32, %v34_v1  ;;  %v41_v8 = vadd.s32 56, %v34_v1  ;;  %v319_v9 = vadd.s32 48, %v34_v1  ;;  %vm44_vm3 = vcmp.eq.s32.totalorder %v34_v1, %v317_v2  ;;  %s257_s24 = scalar_lea.vmem %s173_s23, 512  ;;  %p262_p9 = scmp.lt.s32.totalorder %s173_s23, %s173_s23 }
  0x19   :  { %vm46_vm1 = vcmp.eq.s32.totalorder %v36_v3, %v317_v2  ;;  %vm47_vm4 = vcmp.eq.s32.totalorder %v37_v4, %v317_v2  ;;  %vm45_vm5 = vcmp.eq.s32.totalorder %v35_v5, %v317_v2  ;;  %vm49_vm6 = vcmp.eq.s32.totalorder %v39_v6, %v317_v2  ;;  %p258_p8 = scmp.ne.s32.totalorder %s173_s23, %s257_s24  ;;  %p263_p10 = scmp.lt.s32.totalorder %s257_s24, %s257_s24 }
  0x1a   :  { %vm48_vm7 = vcmp.eq.s32.totalorder %v38_v7, %v317_v2  ;;  %vm51_vm8 = vcmp.eq.s32.totalorder %v41_v8, %v317_v2  ;;  %vm50_vm12 = vcmp.eq.s32.totalorder %v319_v9, %v317_v2  ;;  %v78_v19 = vsel %vm46_vm1, 1.0, %v190_v15 }
  0x1b   :  { %v76_v20 = vsel %vm44_vm3, 1.0, %v188_v16  ;;  %v79_v21 = vsel %vm47_vm4, 1.0, %v191_v17  ;;  %v189_v22 = vsel %vm53_vm13, 1.0, %v286_v14  ;;  %v91_v24 = vsel %vm84_vm0, %v78_v19, 0.0  ;;  %p264_p11 = por %p263_p10, %p262_p9 }
  0x1c   :  { %v206_v25 = vpack.c.bf16 %v78_v19, %v78_v19  ;;  %v85_v26 = vsel %vm84_vm0, %v76_v20, 0.0  ;;  %v204_v27 = vpack.c.bf16 %v76_v20, %v76_v20  ;;  %92 = vadd.xlane.f32.xlu1 %v91_v24  ;;  %v94_v30 = vsel %vm84_vm0, %v79_v21, 0.0 }
  0x1d   :  { %86 = vadd.xlane.f32.xlu0 %v85_v26  ;;  %v207_v31 = vpack.c.bf16 %v79_v21, %v79_v21  ;;  %v77_v32 = vsel %vm45_vm5, 1.0, %v189_v22  ;;  %v193_v35 = vsel %vm57_vm14, 1.0, %v286_v14  ;;  %vm56_vm15 = vcmp.ne.f32.partialorder %v29_v23, 0.0  ;;  %p265_p12 = pnand %p264_p11, %p258_p8 }
  0x1e   :  { %161 = vst.msk [vmem:[#allocation5 + $0x8] sm:$0xf] %vm158_vm2, %v206_v25  ;;  %159 = vst.msk [vmem:[#allocation5] sm:$0xf] %vm158_vm2, %v204_v27  ;;  %v88_v33 = vsel %vm84_vm0, %v77_v32, 0.0  ;;  %v205_v34 = vpack.c.bf16 %v77_v32, %v77_v32  ;;  %v81_v36 = vsel %vm49_vm6, 1.0, %v193_v35 }
  0x1f   :  { %162 = vst.msk [vmem:[#allocation5 + $0xc] sm:$0xf] %vm158_vm2, %v207_v31  ;;  %v192_v37 = vsel %vm56_vm15, 1.0, %v286_v14  ;;  %vm59_vm1 = vcmp.ne.f32.partialorder %v32_v28, 0.0  ;;  %vm58_vm3 = vcmp.ne.f32.partialorder %v31_v29, 0.0  ;;  %v209_v38 = vpack.c.bf16 %v81_v36, %v81_v36 }
  0x20   :  { %160 = vst.msk [vmem:[#allocation5 + $0x4] sm:$0xf] %vm158_vm2, %v205_v34  ;;  %v80_v39 = vsel %vm48_vm7, 1.0, %v192_v37  ;;  %v195_v40 = vsel %vm59_vm1, 1.0, %v286_v14  ;;  %95 = vadd.xlane.f32.xlu1 %v94_v30  ;;  %v194_v43 = vsel %vm58_vm3, 1.0, %v286_v14  ;;  %v100_v44 = vsel %vm84_vm0, %v81_v36, 0.0 }
  0x21   :  { %89 = vadd.xlane.f32.xlu0 %v88_v33  ;;  %v208_v41 = vpack.c.bf16 %v80_v39, %v80_v39  ;;  %v83_v42 = vsel %vm51_vm8, 1.0, %v195_v40  ;;  %164 = vst.msk [vmem:[#allocation5 + $0x14] sm:$0xf] %vm158_vm2, %v209_v38  ;;  %v97_v45 = vsel %vm84_vm0, %v80_v39, 0.0  ;;  %v82_v47 = vsel %vm50_vm12, 1.0, %v194_v43 }
  0x22   :  { %v211_v46 = vpack.c.bf16 %v83_v42, %v83_v42  ;;  %v210_v48 = vpack.c.bf16 %v82_v47, %v82_v47  ;;  %v106_v49 = vsel %vm84_vm0, %v83_v42, 0.0  ;;  %v103_v50 = vsel %vm84_vm0, %v82_v47, 0.0 }
  0x23   :  { %163 = vst.msk [vmem:[#allocation5 + $0x10] sm:$0xf] %vm158_vm2, %v208_v41 }
  0x24   :  { %166 = vst.msk [vmem:[#allocation5 + $0x1c] sm:$0xf] %vm158_vm2, %v211_v46  ;;  %101 = vadd.xlane.f32.xlu1 %v100_v44  ;;  %165 = vst.msk [vmem:[#allocation5 + $0x18] sm:$0xf] %vm158_vm2, %v210_v48 }
  0x25   :  { %98 = vadd.xlane.f32.xlu0 %v97_v45 }
  0x28   :  { %107 = vadd.xlane.f32.xlu1 %v106_v49 }
  0x29   :  { %104 = vadd.xlane.f32.xlu0 %v103_v50 }
  0x2a   :  { %268 = shalt.err (!%p265_p12)
}
  0x2b   :  { %s269_s27 = scalar_lea.hbm %s408_s1, 512 }
  0x2c   :  { %p270_p13 = scmp.ne.s32.totalorder %s408_s1, %s269_s27  ;;  %p273_p0 = scmp.lt.u32.totalorder %s269_s27, %s408_s1 }
  0x2e   :  { %p275_p1 = pnand %p273_p0, %p270_p13 }
  0x30   :  { %278 = shalt.err (!%p275_p1)
}
  0x31   :  { %s288_s4 = smov 64   ;;  %s289_s5 = smov 4   ;;  %vm117_vm0 = vcmask 7168  }
  0x32   :  { %178 = dma.vmem_to_hbm [thread:$0]  %s173_s23, 512, %s408_s1, [#allocation4], %s288_s4, %s288_s4, %s289_s5  }
  0xa9   :  { %v93_v51 = vpop.xlane.xlu1 %92 }
  0xaa   :  { %v87_v52 = vpop.xlane.xlu0 %86  ;;  %219 = vrsqrt.f32 %v93_v51 }
  0xab   :  { %221 = vrsqrt.f32 %v87_v52 }
  0xad   :  { %v96_v53 = vpop.xlane.xlu1 %95 }
  0xae   :  { %v90_v54 = vpop.xlane.xlu0 %89  ;;  %223 = vrsqrt.f32 %v96_v53 }
  0xaf   :  { %225 = vrsqrt.f32 %v90_v54 }
  0xb1   :  { %v102_v55 = vpop.xlane.xlu1 %101 }
  0xb2   :  { %v99_v56 = vpop.xlane.xlu0 %98  ;;  %227 = vrsqrt.f32 %v102_v55 }
  0xb3   :  { %229 = vrsqrt.f32 %v99_v56 }
  0xb4   :  { %v220_v57 = vpop.eup %219 }
  0xb5   :  { %v222_v58 = vpop.eup %221  ;;  %120 = vst.msk [vmem:[%s409_s2 + $0x10] sm:$0xff] %vm117_vm0, %v220_v57  ;;  %v108_v59 = vpop.xlane.xlu1 %107 }
  0xb6   :  { %v105_v60 = vpop.xlane.xlu0 %104  ;;  %118 = vst.msk [vmem:[%s409_s2] sm:$0xff] %vm117_vm0, %v222_v58  ;;  %231 = vrsqrt.f32 %v108_v59 }
  0xb7   :  { %233 = vrsqrt.f32 %v105_v60 }
  0xb8   :  { %v224_v61 = vpop.eup %223 }
  0xb9   :  { %v226_v62 = vpop.eup %225  ;;  %121 = vst.msk [vmem:[%s409_s2 + $0x18] sm:$0xff] %vm117_vm0, %v224_v61 }
  0xba   :  { %119 = vst.msk [vmem:[%s409_s2 + $0x8] sm:$0xff] %vm117_vm0, %v226_v62 }
  0xbc   :  { %v228_v63 = vpop.eup %227 }
  0xbd   :  { %v230_v0 = vpop.eup %229  ;;  %123 = vst.msk [vmem:[%s409_s2 + $0x28] sm:$0xff] %vm117_vm0, %v228_v63 }
  0xbe   :  { %122 = vst.msk [vmem:[%s409_s2 + $0x20] sm:$0xff] %vm117_vm0, %v230_v0 }
  0xc0   :  { %v232_v1 = vpop.eup %231 }
  0xc1   :  { %v234_v2 = vpop.eup %233  ;;  %125 = vst.msk [vmem:[%s409_s2 + $0x38] sm:$0xff] %vm117_vm0, %v232_v1 }
  0xc2   :  { %124 = vst.msk [vmem:[%s409_s2 + $0x30] sm:$0xff] %vm117_vm0, %v234_v2 }
  0xc3   :  { %281 = dma.done.wait [#allocation4], 512  }
  0xc4   :  { %282 = vsyncadd [#allocation4], 4294966784 }
  0xc5   :  { %186 = vsyncpa [#allocation3], 1 }
  0xc6   :  { %187 = vsyncpa [#allocation4], 1 }

</bundles_post_ra>
